<compile_context>
chip_gen: v6e
topology: v6e:2x2x1
jax: 0.10.0
libtpu: 0.0.40
codegen_flags: <defaults>
</compile_context>

<pallas_src>
import functools

import jax
import jax.numpy as jnp
from jax import lax
from jax.experimental import pallas as pl
from jax.experimental.pallas import tpu as pltpu

# Module hyper-parameters (defaults of AsymmetricLoss.__init__).
# Gammas stay Python ints so `** GAMMA` lowers to lax.integer_pow (VPU).
GAMMA_NEG = 4
GAMMA_POS = 0
CLIP = 0.05
EPS = 1e-8


def _asl_kernel(x_ref, y_ref, o_ref, acc_ref, *,
                n_rows, n_cols, block_rows, steps_per, inv_n, mask_needed):
    i = pl.program_id(0)   # parallel slice (sharded across TCs on v7x)
    j = pl.program_id(1)   # reduction step within the slice

    @pl.when(j == 0)
    def _():
        acc_ref[...] = jnp.zeros_like(acc_ref)

    x = x_ref[...].astype(jnp.float32)
    y = y_ref[...]
    is_pos = y if y.dtype == jnp.bool_ else (y > jnp.zeros((), y.dtype))

    # sigmoid via tanh: one EUP op instead of exp + reciprocal.
    xs_pos = 0.5 * jnp.tanh(0.5 * x) + 0.5
    xs_neg = 1.0 - xs_pos
    if CLIP is not None and CLIP > 0:
        xs_neg = jnp.minimum(xs_neg + CLIP, 1.0)

    # y is binarized, so per element only one of the reference's two log terms
    # survives -> a single EUP log per element.
    t = jnp.where(is_pos, xs_pos, xs_neg)
    log_t = jnp.log(jnp.maximum(t, EPS))

    # Focal weights.  For binary y the reference's per-element loss is
    #   y: (1 - xs_pos)**gamma_pos * log(xs_pos)      (weight 1 if gamma_pos=0)
    #   n: (xs_neg_clipped)**gamma_neg * log(xs_neg_clipped)
    w_neg = xs_neg ** GAMMA_NEG if GAMMA_NEG > 0 else jnp.ones_like(xs_neg)
    w_pos = (1.0 - xs_pos) ** GAMMA_POS if GAMMA_POS > 0 else 1.0
    contrib = jnp.where(is_pos, w_pos * log_t, w_neg * log_t)

    def _accumulate(v):
        # Fold rows in groups of 8 on the VPU; accumulator is only (8, n_cols).
        acc_ref[...] += v.reshape(block_rows // 8, 8, n_cols).sum(axis=0)

    if mask_needed:
        gblock = i * steps_per + j
        is_edge = (gblock + 1) * block_rows > n_rows   # row tail or overflow step

        @pl.when(is_edge)
        def _():
            row = gblock * block_rows + lax.broadcasted_iota(
                jnp.int32, contrib.shape, 0)
            _accumulate(jnp.where(row < n_rows, contrib, 0.0))

        @pl.when(jnp.logical_not(is_edge))
        def _():
            _accumulate(contrib)
    else:
        _accumulate(contrib)

    @pl.when(j == pl.num_programs(1) - 1)
    def _():
        # Single XLU reduce per slice, written as a lane-dense (1,8,128) splat.
        total = jnp.sum(acc_ref[...]) * inv_n
        o_ref[...] = jnp.broadcast_to(total, o_ref.shape).astype(jnp.float32)


def _chip_budgets():
    """Return (per-input tile byte budget, vmem_limit_bytes) per TPU generation."""
    vmem_bytes = None
    try:
        info = pltpu.get_tpu_info()
        vmem_bytes = getattr(info, "vmem_capacity_bytes", None)
    except Exception:
        vmem_bytes = None
    if vmem_bytes is None:
        vmem_bytes = 64 << 20            # conservative (v7x-like) fallback
    if vmem_bytes >= (96 << 20):         # v5e / v6e: 128 MiB physical VMEM
        return 4 << 20, 64 << 20
    return 3 << 20, 32 << 20             # v7x: 64 MiB physical per TC


def asymmetric_loss(x, y, *, reduction="mean", block_rows=None):
    """Pallas TPU implementation of AsymmetricLoss(...).forward."""
    assert x.shape == y.shape and x.ndim >= 2
    if x.ndim > 2:
        x = x.reshape(-1, x.shape[-1])
        y = y.reshape(-1, y.shape[-1])
    n_rows, n_cols = x.shape

    if reduction == "mean":
        inv_n = 1.0 / float(n_rows * n_cols)
    elif reduction == "sum":
        inv_n = 1.0
    else:
        # TODO(synk): reduction='none' (per-element output) not implemented.
        raise NotImplementedError("only 'mean' and 'sum' reductions supported")

    tile_budget, vmem_limit = _chip_budgets()

    # Align rows to the sublane packing of the narrowest input dtype
    # (8 for f32, 16 for bf16, 32 for int8/bool).
    row_align = max(8,
                    32 // jnp.dtype(x.dtype).itemsize,
                    32 // jnp.dtype(y.dtype).itemsize)
    rows_padded = pl.cdiv(n_rows, row_align) * row_align

    if block_rows is None:
        itemsize = max(jnp.dtype(x.dtype).itemsize, jnp.dtype(y.dtype).itemsize)
        budget_rows = max(
            row_align,
            (tile_budget // (itemsize * n_cols)) // row_align * row_align)
        block_rows = int(min(budget_rows, rows_padded))
    else:
        block_rows = int(min(max(row_align, (block_rows // row_align) * row_align),
                             rows_padded))

    total_blocks = pl.cdiv(n_rows, block_rows)
    # Always split into 2 slices when possible so v7x keeps both TCs busy;
    # odd block counts get one clamped+masked overflow step on slice 1.
    n_par = 2 if total_blocks >= 2 else 1
    steps_per = pl.cdiv(total_blocks, n_par)
    mask_needed = (n_rows % block_rows != 0) or (n_par * steps_per != total_blocks)

    kernel = functools.partial(
        _asl_kernel, n_rows=n_rows, n_cols=n_cols, block_rows=block_rows,
        steps_per=steps_per, inv_n=inv_n, mask_needed=mask_needed)

    last_block = total_blocks - 1
    if n_par * steps_per == total_blocks:
        def in_map(i, j):
            return (i * steps_per + j, 0)
    else:
        def in_map(i, j):
            # Clamp the overflow step of the ceil-split; its contribution is
            # fully masked inside the kernel.
            return (jnp.minimum(i * steps_per + j, last_block), 0)

    partials = pl.pallas_call(
        kernel,
        out_shape=jax.ShapeDtypeStruct((n_par, 8, 128), jnp.float32),
        grid_spec=pltpu.PrefetchScalarGridSpec(
            num_scalar_prefetch=0,
            grid=(n_par, steps_per),
            in_specs=[
                pl.BlockSpec((block_rows, n_cols), in_map),
                pl.BlockSpec((block_rows, n_cols), in_map),
            ],
            out_specs=pl.BlockSpec((1, 8, 128), lambda i, j: (i, 0, 0)),
            scratch_shapes=[pltpu.VMEM((8, n_cols), jnp.float32)],
        ),
        compiler_params=pltpu.CompilerParams(
            dimension_semantics=("parallel", "arbitrary"),
            vmem_limit_bytes=vmem_limit,
        ),
    )(x, y)

    # Combine the per-slice partials (each already scaled by inv_n).
    return jnp.sum(partials[:, 0, 0])


def _reference_asl(x, y, reduction="mean"):
    """Pure-JAX transcription of the PyTorch module (source of truth)."""
    x = x.astype(jnp.float32)
    y = y.astype(jnp.float32)
    xs_pos = jax.nn.sigmoid(x)
    xs_neg = 1.0 - xs_pos
    if CLIP is not None and CLIP > 0:
        xs_neg = jnp.minimum(xs_neg + CLIP, 1.0)
    los_pos = y * jnp.log(jnp.maximum(xs_pos, EPS))
    los_neg = (1.0 - y) * jnp.log(jnp.maximum(xs_neg, EPS))
    loss = los_pos + los_neg
    if GAMMA_NEG > 0 or GAMMA_POS > 0:
        if GAMMA_POS > 0:
            loss_pos = -((1.0 - xs_pos * y) ** GAMMA_POS) * los_pos
        else:
            loss_pos = -los_pos
        if GAMMA_NEG > 0:
            loss_neg = -((xs_neg * (1.0 - y)) ** GAMMA_NEG) * los_neg
        else:
            loss_neg = -los_neg
        loss = loss_pos + loss_neg
    loss = -loss
    return jnp.mean(loss) if reduction == "mean" else jnp.sum(loss)


if __name__ == "__main__":
    key = jax.random.PRNGKey(0)
    k1, k2, k3, k4, k5, k6, k7, k8 = jax.random.split(key, 8)

    # 1) Basic: multi-label logits (batch=32, classes=128), f32.
    x1 = jax.random.normal(k1, (32, 128), dtype=jnp.float32) * 2.0
    y1 = (jax.random.uniform(k2, (32, 128)) > 0.7).astype(jnp.float32)
    out1 = jax.block_until_ready(asymmetric_loss(x1, y1))
    ref1 = _reference_asl(x1, y1)
    assert jnp.allclose(out1, ref1, rtol=1e-5, atol=1e-5), (out1, ref1)

    # 2) Odd block count -> ceil 2-way split + clamped/masked overflow step.
    x2 = jax.random.normal(k3, (40, 128), dtype=jnp.float32) * 2.0
    y2 = (jax.random.uniform(k4, (40, 128)) > 0.7).astype(jnp.float32)
    out2 = jax.block_until_ready(asymmetric_loss(x2, y2, block_rows=16))
    ref2 = _reference_asl(x2, y2)
    assert jnp.allclose(out2, ref2, rtol=1e-5, atol=1e-5), (out2, ref2)

    # 3) Ragged rows / non-128 classes: row-tail mask + padded lanes.
    x3 = jax.random.normal(k5, (30, 96), dtype=jnp.float32) * 2.0
    y3 = (jax.random.uniform(k6, (30, 96)) > 0.7).astype(jnp.float32)
    out3 = jax.block_until_ready(asymmetric_loss(x3, y3, block_rows=8))
    ref3 = _reference_asl(x3, y3)
    assert jnp.allclose(out3, ref3, rtol=1e-5, atol=1e-5), (out3, ref3)

    # 4) Narrow input dtypes end-to-end (bf16 logits, int8 targets).
    x4 = (jax.random.normal(k7, (64, 128), dtype=jnp.float32) * 2.0
          ).astype(jnp.bfloat16)
    y4 = (jax.random.uniform(k8, (64, 128)) > 0.7).astype(jnp.int8)
    out4 = jax.block_until_ready(asymmetric_loss(x4, y4))
    ref4 = _reference_asl(x4, y4)
    assert jnp.allclose(out4, ref4, rtol=1e-5, atol=1e-5), (out4, ref4)

    print("KERNEL_OK")
</pallas_src>

<mosaic_0001>
module attributes {stable_mosaic.version = 11 : i64} {
  func.func @_asl_kernel(%arg0: i32, %arg1: i32, %arg2: memref<32x128xf32, #tpu.memory_space<vmem>>, %arg3: memref<32x128xf32, #tpu.memory_space<vmem>>, %arg4: memref<1x8x128xf32, #tpu.memory_space<vmem>>, %arg5: memref<8x128xf32, #tpu.memory_space<vmem>>) attributes {dimension_semantics = [#tpu.dimension_semantics<parallel>, #tpu.dimension_semantics<arbitrary>], iteration_bounds = array<i64: 1, 1>, scalar_prefetch = 0 : i64, scratch_operands = 1 : i64, tpu.core_type = #tpu.core_type<tc>, window_params = [{transform_indices = @transform_0, window_bounds = array<i64: 32, 128>}, {transform_indices = @transform_1, window_bounds = array<i64: 32, 128>}, {transform_indices = @transform_2, window_bounds = array<i64: 1, 8, 128>}]} {
    %c0_i32 = arith.constant 0 : i32
    %0 = arith.cmpi eq, %arg1, %c0_i32 : i32
    %1 = arith.extui %0 : i1 to i32
    %c0_i32_0 = arith.constant 0 : i32
    %2 = arith.cmpi ne, %1, %c0_i32_0 : i32
    scf.if %2 {
      %cst_19 = arith.constant 0.000000e+00 : f32
      %38 = vector.broadcast %cst_19 : f32 to vector<8x128xf32>
      %c0_20 = arith.constant 0 : index
      %c0_21 = arith.constant 0 : index
      %39 = vector.load %arg5[%c0_20, %c0_21] : memref<8x128xf32, #tpu.memory_space<vmem>>, vector<8x128xf32>
      tpu.vector_store %arg5[%c0_20, %c0_21], %38 {strides = array<i32>} : memref<8x128xf32, #tpu.memory_space<vmem>>, vector<8x128xf32>,
    } else {
    }
    %c0 = arith.constant 0 : index
    %c0_1 = arith.constant 0 : index
    %3 = vector.load %arg2[%c0, %c0_1] : memref<32x128xf32, #tpu.memory_space<vmem>>, vector<32x128xf32>
    %c0_2 = arith.constant 0 : index
    %c0_3 = arith.constant 0 : index
    %4 = vector.load %arg3[%c0_2, %c0_3] : memref<32x128xf32, #tpu.memory_space<vmem>>, vector<32x128xf32>
    %cst = arith.constant 0.000000e+00 : f32
    %5 = vector.broadcast %cst : f32 to vector<32x128xf32>
    %6 = arith.cmpf ogt, %4, %5 : vector<32x128xf32>
    %cst_4 = arith.constant 5.000000e-01 : f32
    %7 = vector.broadcast %cst_4 : f32 to vector<32x128xf32>
    %8 = arith.mulf %7, %3 : vector<32x128xf32>
    %9 = math.tanh %8 : vector<32x128xf32>
    %cst_5 = arith.constant 5.000000e-01 : f32
    %10 = vector.broadcast %cst_5 : f32 to vector<32x128xf32>
    %11 = arith.mulf %10, %9 : vector<32x128xf32>
    %cst_6 = arith.constant 5.000000e-01 : f32
    %12 = vector.broadcast %cst_6 : f32 to vector<32x128xf32>
    %13 = arith.addf %11, %12 : vector<32x128xf32>
    %cst_7 = arith.constant 1.000000e+00 : f32
    %14 = vector.broadcast %cst_7 : f32 to vector<32x128xf32>
    %15 = arith.subf %14, %13 : vector<32x128xf32>
    %cst_8 = arith.constant 5.000000e-02 : f32
    %16 = vector.broadcast %cst_8 : f32 to vector<32x128xf32>
    %17 = arith.addf %15, %16 : vector<32x128xf32>
    %cst_9 = arith.constant 1.000000e+00 : f32
    %18 = vector.broadcast %cst_9 : f32 to vector<32x128xf32>
    %19 = arith.minimumf %17, %18 : vector<32x128xf32>
    %20 = arith.select %6, %13, %19 : vector<32x128xi1>, vector<32x128xf32>
    %cst_10 = arith.constant 9.99999993E-9 : f32
    %21 = vector.broadcast %cst_10 : f32 to vector<32x128xf32>
    %22 = arith.maximumf %20, %21 : vector<32x128xf32>
    %23 = math.log %22 : vector<32x128xf32>
    %24 = arith.mulf %19, %19 : vector<32x128xf32>
    %25 = arith.mulf %24, %24 : vector<32x128xf32>
    %cst_11 = arith.constant 1.000000e+00 : f32
    %26 = vector.broadcast %cst_11 : f32 to vector<32x128xf32>
    %27 = arith.mulf %26, %23 : vector<32x128xf32>
    %28 = arith.mulf %25, %23 : vector<32x128xf32>
    %29 = arith.select %6, %27, %28 : vector<32x128xi1>, vector<32x128xf32>
    %c0_12 = arith.constant 0 : index
    %c0_13 = arith.constant 0 : index
    %30 = vector.load %arg5[%c0_12, %c0_13] : memref<8x128xf32, #tpu.memory_space<vmem>>, vector<8x128xf32>
    %31 = vector.shape_cast %29 : vector<32x128xf32> to vector<4x8x128xf32>
    %cst_14 = arith.constant dense<0.000000e+00> : vector<8x128xf32>
    %32 = vector.multi_reduction <add>, %31, %cst_14 [0] : vector<4x8x128xf32> to vector<8x128xf32>
    %33 = arith.addf %30, %32 : vector<8x128xf32>
    %c0_15 = arith.constant 0 : index
    %c0_16 = arith.constant 0 : index
    %34 = vector.load %arg5[%c0_15, %c0_16] : memref<8x128xf32, #tpu.memory_space<vmem>>, vector<8x128xf32>
    tpu.vector_store %arg5[%c0_15, %c0_16], %33 {strides = array<i32>} : memref<8x128xf32, #tpu.memory_space<vmem>>, vector<8x128xf32>,
    %c0_i32_17 = arith.constant 0 : i32
    %35 = arith.cmpi eq, %arg1, %c0_i32_17 : i32
    %36 = arith.extui %35 : i1 to i32
    %c0_i32_18 = arith.constant 0 : i32
    %37 = arith.cmpi ne, %36, %c0_i32_18 : i32
    scf.if %37 {
      %c0_19 = arith.constant 0 : index
      %c0_20 = arith.constant 0 : index
      %38 = vector.load %arg5[%c0_19, %c0_20] : memref<8x128xf32, #tpu.memory_space<vmem>>, vector<8x128xf32>
      %39 = vector.shape_cast %38 : vector<8x128xf32> to vector<1x8x128xf32>
      %cst_21 = arith.constant dense<0.000000e+00> : vector<1xf32>
      %40 = vector.multi_reduction <add>, %39, %cst_21 [1, 2] : vector<1x8x128xf32> to vector<1xf32>
      %41 = vector.shape_cast %40 : vector<1xf32> to vector<1x1x1xf32>
      %42 = vector.extract %41[0, 0, 0] : f32 from vector<1x1x1xf32>
      %cst_22 = arith.constant 2.44140625E-4 : f32
      %43 = arith.mulf %42, %cst_22 : f32
      %44 = vector.broadcast %43 : f32 to vector<1x8x128xf32>
      %c0_23 = arith.constant 0 : index
      %c0_24 = arith.constant 0 : index
      %c0_25 = arith.constant 0 : index
      %45 = vector.load %arg4[%c0_23, %c0_24, %c0_25] : memref<1x8x128xf32, #tpu.memory_space<vmem>>, vector<1x8x128xf32>
      tpu.vector_store %arg4[%c0_23, %c0_24, %c0_25], %44 {strides = array<i32>} : memref<1x8x128xf32, #tpu.memory_space<vmem>>, vector<1x8x128xf32>,
    } else {
    }
    return
  }
  func.func @transform_0(%arg0: i32, %arg1: i32) -> (i32, i32) {
    %c1_i32 = arith.constant 1 : i32
    %0 = arith.muli %arg0, %c1_i32 : i32
    %1 = arith.addi %0, %arg1 : i32
    %c0_i32 = arith.constant 0 : i32
    %c0_i32_0 = arith.constant 0 : i32
    return %1, %c0_i32 : i32, i32
  }
  func.func @transform_1(%arg0: i32, %arg1: i32) -> (i32, i32) {
    %c1_i32 = arith.constant 1 : i32
    %0 = arith.muli %arg0, %c1_i32 : i32
    %1 = arith.addi %0, %arg1 : i32
    %c0_i32 = arith.constant 0 : i32
    %c0_i32_0 = arith.constant 0 : i32
    return %1, %c0_i32 : i32, i32
  }
  func.func @transform_2(%arg0: i32, %arg1: i32) -> (i32, i32, i32) {
    %c0_i32 = arith.constant 0 : i32
    %c0_i32_0 = arith.constant 0 : i32
    %c0_i32_1 = arith.constant 0 : i32
    return %arg0, %c0_i32, %c0_i32_0 : i32, i32, i32
  }
}

</mosaic_0001>

<bundles_post_ra>
// kernel: tpu_custom_call.1
= control target key start
LH: loop header
LB: loop body
LE: loop exit
PB: predicated region body
PF: predicated region fallthrough
CT: control target
= control target key end

     0   :  { %7 = vsyncpa [#allocation4], 0  ;;  %s293_s0 = inlined_call_operand.hbm [shape: f32[32,128], index: 0, kind: input, shape index: {}]   ;;  %s294_s1 = inlined_call_operand.hbm [shape: f32[32,128], index: 1, kind: input, shape index: {}]   ;;  %s295_s2 = inlined_call_operand.hbm [shape: f32[1,8,128], index: 2, kind: output, shape index: {}]  }
   0x1   :  { %8 = vsyncpa [#allocation7], 0 }
   0x2   :  { %9 = vsyncpa [#allocation5], 0  ;;  %s256_s9 = smov [#allocation3]  }
   0x3   :  { %s19_s10 = sshll.u32 %s256_s9, 4  ;;  %s20_s10 = int_to_ptr.vmem [resolvable:$true] %s19_s10 }
   0x4   :  { %s198_s11 = scalar_lea.vmem %s20_s10, 512  ;;  %p203_p1 = scmp.lt.s32.totalorder %s20_s10, %s20_s10 }
   0x5   :  { %p199_p0 = scmp.ne.s32.totalorder %s20_s10, %s198_s11  ;;  %p204_p2 = scmp.lt.s32.totalorder %s198_s11, %s198_s11 }
   0x7   :  { %p205_p3 = por %p204_p2, %p203_p1 }
   0x9   :  { %p206_p4 = pnand %p205_p3, %p199_p0 }
   0xb   :  { %209 = shalt.err (!%p206_p4)
}
   0xc   :  { %s257_s12 = smov 128   ;;  %s258_s13 = smov 8  }
   0xd   :  { %25 = dma.hbm_to_vmem [thread:$0]  %s293_s0, 512, %s20_s10, [#allocation4], %s257_s12, %s257_s12, %s258_s13  }
   0xe   :  { %s259_s16 = smov [#allocation6]  }
   0xf   :  { %s35_s17 = sshll.u32 %s259_s16, 4  ;;  %s36_s17 = int_to_ptr.vmem [resolvable:$true] %s35_s17 }
  0x10   :  { %s218_s18 = scalar_lea.vmem %s36_s17, 512  ;;  %p223_p6 = scmp.lt.s32.totalorder %s36_s17, %s36_s17 }
  0x11   :  { %p219_p5 = scmp.ne.s32.totalorder %s36_s17, %s218_s18  ;;  %p224_p7 = scmp.lt.s32.totalorder %s218_s18, %s218_s18 }
  0x13   :  { %p225_p8 = por %p224_p7, %p223_p6 }
  0x15   :  { %p226_p9 = pnand %p225_p8, %p219_p5 }
  0x17   :  { %229 = shalt.err (!%p226_p9)
}
  0x18   :  { %41 = dma.hbm_to_vmem [thread:$0]  %s294_s1, 512, %s36_s17, [#allocation7], %s257_s12, %s257_s12, %s258_s13  }
  0x19   :  { %250 = dma.done.wait [#allocation4], 512  }
  0x1a   :  { %251 = vsyncadd [#allocation4], 4294966784 }
  0x1b   :  { %252 = dma.done.wait [#allocation7], 512  }
  0x1c   :  { %253 = vsyncadd [#allocation7], 4294966784  ;;  %v57_v0 = vld [vmem:[#allocation3] sm:$0xff]  ;;  %v58_v1 = vld [vmem:[#allocation3 + $0x8] sm:$0xff]  ;;  %s260_s0 = smov [#allocation8]  }
  0x1d   :  { %v59_v2 = vld [vmem:[#allocation3 + $0x10] sm:$0xff]  ;;  %v60_v3 = vld [vmem:[#allocation3 + $0x18] sm:$0xff]  ;;  %v69_v4 = vmul.f32 0.5, %v57_v0  ;;  %v70_v5 = vmul.f32 0.5, %v58_v1  ;;  %v61_v18 = vld [vmem:[#allocation6] sm:$0xff]  ;;  %s157_s1 = sshll.u32 %s260_s0, 4  ;;  %s158_s1 = int_to_ptr.vmem [resolvable:$true] %s157_s1 }
  0x1e   :  { %v71_v6 = vmul.f32 0.5, %v59_v2  ;;  %v72_v7 = vmul.f32 0.5, %v60_v3  ;;  %v62_v21 = vld [vmem:[#allocation6 + $0x8] sm:$0xff]  ;;  %v63_v24 = vld [vmem:[#allocation6 + $0x10] sm:$0xff]  ;;  %v64_v27 = vld [vmem:[#allocation6 + $0x18] sm:$0xff]  ;;  %vm65_vm0 = vcmp.gt.f32.partialorder %v61_v18, 0.0  ;;  %p235_p11 = scmp.lt.s32.totalorder %s158_s1, %s158_s1 }
  0x1f   :  { %174 = vtanh.f32 %v69_v4  ;;  %vm66_vm1 = vcmp.gt.f32.partialorder %v62_v21, 0.0  ;;  %vm67_vm2 = vcmp.gt.f32.partialorder %v63_v24, 0.0  ;;  %vm68_vm3 = vcmp.gt.f32.partialorder %v64_v27, 0.0  ;;  %s230_s23 = scalar_lea.vmem %s158_s1, 128 }
  0x20   :  { %176 = vtanh.f32 %v70_v5  ;;  %p231_p10 = scmp.ne.s32.totalorder %s158_s1, %s230_s23  ;;  %p236_p12 = scmp.lt.s32.totalorder %s230_s23, %s230_s23 }
  0x21   :  { %178 = vtanh.f32 %v71_v6 }
  0x22   :  { %180 = vtanh.f32 %v72_v7  ;;  %p237_p13 = por %p236_p12, %p235_p11 }
  0x24   :  { %p238_p0 = pnand %p237_p13, %p231_p10 }
  0x2c   :  { %v175_v8 = vpop.eup %174 }
  0x2d   :  { %v177_v9 = vpop.eup %176  ;;  %v77_v10 = vmul.f32 0.5, %v175_v8 }
  0x2e   :  { %v179_v11 = vpop.eup %178  ;;  %v78_v12 = vmul.f32 0.5, %v177_v9 }
  0x2f   :  { %v181_v13 = vpop.eup %180  ;;  %v79_v14 = vmul.f32 0.5, %v179_v11  ;;  %v81_v15 = vadd.f32 0.5, %v77_v10 }
  0x30   :  { %v80_v16 = vmul.f32 0.5, %v181_v13  ;;  %v82_v17 = vadd.f32 0.5, %v78_v12 }
  0x31   :  { %v83_v19 = vadd.f32 0.5, %v79_v14  ;;  %v85_v20 = vsub.f32 1.0, %v81_v15 }
  0x32   :  { %v84_v22 = vadd.f32 0.5, %v80_v16  ;;  %v86_v23 = vsub.f32 1.0, %v82_v17 }
  0x33   :  { %v87_v25 = vsub.f32 1.0, %v83_v19  ;;  %v89_v26 = vadd.f32 0.05, %v85_v20 }
  0x34   :  { %v88_v28 = vsub.f32 1.0, %v84_v22  ;;  %v90_v29 = vadd.f32 0.05, %v86_v23 }
  0x35   :  { %v91_v30 = vadd.f32 0.05, %v87_v25  ;;  %v93_v31 = vmin.f32 %v89_v26, 1.0 }
  0x36   :  { %v92_v32 = vadd.f32 0.05, %v88_v28  ;;  %v94_v33 = vmin.f32 %v90_v29, 1.0 }
  0x37   :  { %v95_v34 = vmin.f32 %v91_v30, 1.0  ;;  %v97_v35 = vsel %vm65_vm0, %v81_v15, %v93_v31  ;;  %v113_v44 = vmul.f32 %v93_v31, %v93_v31 }
  0x38   :  { %v96_v36 = vmin.f32 %v92_v32, 1.0  ;;  %v98_v37 = vsel %vm66_vm1, %v82_v17, %v94_v33  ;;  %v101_v38 = vmax.f32 %v97_v35, 1e-08  ;;  %v114_v45 = vmul.f32 %v94_v33, %v94_v33 }
  0x39   :  { %v99_v39 = vsel %vm67_vm2, %v83_v19, %v95_v34  ;;  %v102_v40 = vmax.f32 %v98_v37, 1e-08  ;;  %v115_v46 = vmul.f32 %v95_v34, %v95_v34  ;;  %v117_v48 = vmul.f32 %v113_v44, %v113_v44 }
  0x3a   :  { %v100_v41 = vsel %vm68_vm3, %v84_v22, %v96_v36  ;;  %v103_v42 = vmax.f32 %v99_v39, 1e-08  ;;  %182 = vlog2.f32 %v101_v38  ;;  %v116_v47 = vmul.f32 %v96_v36, %v96_v36 }
  0x3b   :  { %v104_v43 = vmax.f32 %v100_v41, 1e-08  ;;  %184 = vlog2.f32 %v102_v40  ;;  %v118_v50 = vmul.f32 %v114_v45, %v114_v45  ;;  %v119_v53 = vmul.f32 %v115_v46, %v115_v46 }
  0x3c   :  { %186 = vlog2.f32 %v103_v42  ;;  %v120_v56 = vmul.f32 %v116_v47, %v116_v47 }
  0x3d   :  { %188 = vlog2.f32 %v104_v43 }
  0x47   :  { %v183_v49 = vpop.eup %182 }
  0x48   :  { %v185_v51 = vpop.eup %184  ;;  %v106_v52 = vmul.f32 0.6931472, %v183_v49 }
  0x49   :  { %v187_v54 = vpop.eup %186  ;;  %v108_v55 = vmul.f32 0.6931472, %v185_v51 }
  0x4a   :  { %v189_v57 = vpop.eup %188  ;;  %v110_v58 = vmul.f32 0.6931472, %v187_v54  ;;  %v121_v59 = vmul.f32 %v117_v48, %v106_v52 }
  0x4b   :  { %v112_v60 = vmul.f32 0.6931472, %v189_v57  ;;  %v122_v61 = vmul.f32 %v118_v50, %v108_v55 }
  0x4c   :  { %v123_v62 = vmul.f32 %v119_v53, %v110_v58  ;;  %v125_v63 = vsel %vm65_vm0, %v106_v52, %v121_v59 }
  0x4d   :  { %v124_v0 = vmul.f32 %v120_v56, %v112_v60  ;;  %v126_v1 = vsel %vm66_vm1, %v108_v55, %v122_v61 }
  0x4e   :  { %v127_v2 = vsel %vm67_vm2, %v110_v58, %v123_v62  ;;  %v130_v3 = vadd.f32 %v126_v1, %v125_v63 }
  0x4f   :  { %v128_v4 = vsel %vm68_vm3, %v112_v60, %v124_v0 }
  0x50   :  { %v131_v5 = vadd.f32 %v130_v3, %v127_v2 }
  0x52   :  { %v132_v6 = vadd.f32 %v131_v5, %v128_v4 }
  0x54   :  { %139 = vadd.xlane.f32.xlu0 %v132_v6 }
  0xdd   :  { %v140_v7 = vpop.xlane.xlu0 %139 }
  0xde   :  { %v141_v8 = vrot.slane %v140_v7, 4 }
  0xe0   :  { %v142_v9 = vadd.f32 %v141_v8, %v140_v7 }
  0xe2   :  { %v143_v10 = vrot.slane %v142_v9, 2 }
  0xe4   :  { %v144_v11 = vadd.f32 %v143_v10, %v142_v9 }
  0xe6   :  { %v145_v12 = vrot.slane %v144_v11, 1 }
  0xe8   :  { %v146_v13 = vadd.f32 %v145_v12, %v144_v11 }
  0xea   :  { %167 = vpush %v146_v13 }
 0x11b   :  { %s168_s21 = spop %167 }
 0x11c   :  { %s148_s22 = smul.f32 0.00024414063, %s168_s21 }
 0x11e   :  { %v149_v14 = vstv %s148_s22 }
 0x11f   :  { %150 = vst [vmem:[#allocation8] sm:$0xff] %v149_v14 }
 0x120   :  { %241 = shalt.err (!%p238_p0)
}
 0x121   :  { %160 = dma.vmem_to_hbm [thread:$0]  %s158_s1, 128, %s295_s2, [#allocation5]  }
 0x122   :  { %254 = dma.done.wait [#allocation5], 128  }
 0x123   :  { %255 = vsyncadd [#allocation5], 4294967168 }
 0x124   :  { %164 = vsyncpa [#allocation4], 1 }
 0x125   :  { %165 = vsyncpa [#allocation7], 1 }
 0x126   :  { %166 = vsyncpa [#allocation5], 1 }

</bundles_post_ra>
